<compile_context>
chip_gen: v6e
topology: v6e:2x2x1
jax: 0.10.0
libtpu: 0.0.40
codegen_flags: <defaults>
</compile_context>

<pallas_src>
import jax
import jax.numpy as jnp
from jax.experimental import pallas as pl
from jax.experimental.pallas import tpu as pltpu

STATE_SIZE = 12
ACTION_SIZE = 4
HIDDEN1 = 128
HIDDEN2 = 64
LN_EPS = 1e-5  # PyTorch nn.LayerNorm default


def _round_up(n, m):
    return ((n + m - 1) // m) * m


def _layernorm(h, gamma, beta):
    # sum / sumsq formulation: both reductions issue back-to-back (no serial
    # mean -> center -> second-reduce dependency).
    n = h.shape[-1]
    inv_n = 1.0 / n
    s = jnp.sum(h, axis=-1, keepdims=True)
    ss = jnp.sum(h * h, axis=-1, keepdims=True)
    mu = s * inv_n
    var = jnp.maximum(ss * inv_n - mu * mu, 0.0)
    return (h - mu) * jax.lax.rsqrt(var + LN_EPS) * gamma + beta


def dqn_kernel(x_ref,
               w1_ref, b1_ref, g1_ref, be1_ref,
               w2_ref, b2_ref, g2_ref, be2_ref,
               w3_ref, b3_ref,
               o_ref):
    x = x_ref[...]

    # fc1 + LayerNorm(128) + ReLU
    h1 = jnp.dot(x, w1_ref[...], preferred_element_type=jnp.float32) + b1_ref[...]
    h1 = jnp.maximum(_layernorm(h1, g1_ref[...], be1_ref[...]), 0.0)

    # fc2 + LayerNorm(64) + ReLU
    h2 = jnp.dot(h1, w2_ref[...], preferred_element_type=jnp.float32) + b2_ref[...]
    h2 = jnp.maximum(_layernorm(h2, g2_ref[...], be2_ref[...]), 0.0)

    # fc3 (Q-values)
    # TODO(synk): output last-dim is 4 -> masked vst; a (ACTION_SIZE, B)
    # transposed layout would make stores lane-dense (minor win here).
    o_ref[...] = (jnp.dot(h2, w3_ref[...], preferred_element_type=jnp.float32)
                  + b3_ref[...]).astype(o_ref.dtype)


def dqn_forward(x, params, *, tb=512):
    """Batch-tiled fused DQN forward. tb = batch tile (rounded to multiple of 8)."""
    B = x.shape[0]
    TB = min(_round_up(tb, 8), _round_up(B, 8))
    Bp = _round_up(B, TB)
    if Bp != B:
        x = jnp.pad(x, ((0, Bp - B), (0, 0)))  # padded rows are harmless (per-row LN)

    args = (x,
            params["w1"], params["b1"], params["g1"], params["be1"],
            params["w2"], params["b2"], params["g2"], params["be2"],
            params["w3"], params["b3"])

    def resident_spec(a):
        # Constant index_map -> the same (full) block every grid step; the
        # pipeline keeps these weights/params VMEM-resident instead of
        # re-fetching them per tile.
        return pl.BlockSpec(a.shape, lambda i: (0,) * a.ndim)

    in_specs = ([pl.BlockSpec((TB, STATE_SIZE), lambda i: (i, 0))]
                + [resident_spec(a) for a in args[1:]])

    out = pl.pallas_call(
        dqn_kernel,
        out_shape=jax.ShapeDtypeStruct((Bp, ACTION_SIZE), jnp.float32),
        grid_spec=pltpu.PrefetchScalarGridSpec(
            num_scalar_prefetch=0,
            grid=(Bp // TB,),
            in_specs=in_specs,
            out_specs=pl.BlockSpec((TB, ACTION_SIZE), lambda i: (i, 0)),
        ),
        compiler_params=pltpu.CompilerParams(
            dimension_semantics=("parallel",),   # v7x: shard batch tiles across both TCs
            vmem_limit_bytes=32 * 1024 * 1024,   # safe even under v5e's 16 MiB default
        ),
    )(*args)
    return out[:B]


def init_params(key):
    ks = jax.random.split(key, 6)

    def linear(kw, kb, fan_in, fan_out):
        # Kaiming-uniform-ish deterministic init (shapes match nn.Linear).
        bound = 1.0 / jnp.sqrt(fan_in)
        w = jax.random.uniform(kw, (fan_in, fan_out), jnp.float32, -bound, bound)
        b = jax.random.uniform(kb, (1, fan_out), jnp.float32, -bound, bound)
        return w, b

    w1, b1 = linear(ks[0], ks[1], STATE_SIZE, HIDDEN1)
    w2, b2 = linear(ks[2], ks[3], HIDDEN1, HIDDEN2)
    w3, b3 = linear(ks[4], ks[5], HIDDEN2, ACTION_SIZE)
    return {
        "w1": w1, "b1": b1,
        "g1": jnp.ones((1, HIDDEN1), jnp.float32), "be1": jnp.zeros((1, HIDDEN1), jnp.float32),
        "w2": w2, "b2": b2,
        "g2": jnp.ones((1, HIDDEN2), jnp.float32), "be2": jnp.zeros((1, HIDDEN2), jnp.float32),
        "w3": w3, "b3": b3,
    }


def dqn_reference(x, p):
    h1 = x @ p["w1"] + p["b1"]
    mu = jnp.mean(h1, -1, keepdims=True)
    var = jnp.mean((h1 - mu) ** 2, -1, keepdims=True)
    h1 = jnp.maximum((h1 - mu) / jnp.sqrt(var + LN_EPS) * p["g1"] + p["be1"], 0.0)
    h2 = h1 @ p["w2"] + p["b2"]
    mu = jnp.mean(h2, -1, keepdims=True)
    var = jnp.mean((h2 - mu) ** 2, -1, keepdims=True)
    h2 = jnp.maximum((h2 - mu) / jnp.sqrt(var + LN_EPS) * p["g2"] + p["be2"], 0.0)
    return h2 @ p["w3"] + p["b3"]


if __name__ == "__main__":
    key = jax.random.PRNGKey(0)
    kx, kp = jax.random.split(key)
    B = 64
    x = jax.random.normal(kx, (B, STATE_SIZE), jnp.float32)
    params = init_params(kp)

    # Small tile to exercise a multi-step batch grid even at this small B
    # (production default tb=512 amortizes per-step overhead / hits HBM roofline).
    q = dqn_forward(x, params, tb=16)
    jax.block_until_ready(q)

    q_ref = dqn_reference(x, params)
    assert q.shape == (B, ACTION_SIZE)
    assert jnp.allclose(q, q_ref, atol=1e-4, rtol=1e-4)
    print("KERNEL_OK")
</pallas_src>

<mosaic_0001>
module attributes {stable_mosaic.version = 11 : i64} {
  func.func @dqn_kernel(%arg0: i32, %arg1: memref<16x12xf32, #tpu.memory_space<vmem>>, %arg2: memref<12x128xf32, #tpu.memory_space<vmem>>, %arg3: memref<1x128xf32, #tpu.memory_space<vmem>>, %arg4: memref<1x128xf32, #tpu.memory_space<vmem>>, %arg5: memref<1x128xf32, #tpu.memory_space<vmem>>, %arg6: memref<128x64xf32, #tpu.memory_space<vmem>>, %arg7: memref<1x64xf32, #tpu.memory_space<vmem>>, %arg8: memref<1x64xf32, #tpu.memory_space<vmem>>, %arg9: memref<1x64xf32, #tpu.memory_space<vmem>>, %arg10: memref<64x4xf32, #tpu.memory_space<vmem>>, %arg11: memref<1x4xf32, #tpu.memory_space<vmem>>, %arg12: memref<16x4xf32, #tpu.memory_space<vmem>>) attributes {dimension_semantics = [#tpu.dimension_semantics<parallel>], iteration_bounds = array<i64: 4>, scalar_prefetch = 0 : i64, scratch_operands = 0 : i64, tpu.core_type = #tpu.core_type<tc>, window_params = [{transform_indices = @transform_0, window_bounds = array<i64: 16, 12>}, {pipeline_mode = #tpu.pipeline_mode<synchronous>, transform_indices = @transform_1, window_bounds = array<i64: 12, 128>}, {pipeline_mode = #tpu.pipeline_mode<synchronous>, transform_indices = @transform_2, window_bounds = array<i64: 1, 128>}, {pipeline_mode = #tpu.pipeline_mode<synchronous>, transform_indices = @transform_3, window_bounds = array<i64: 1, 128>}, {pipeline_mode = #tpu.pipeline_mode<synchronous>, transform_indices = @transform_4, window_bounds = array<i64: 1, 128>}, {pipeline_mode = #tpu.pipeline_mode<synchronous>, transform_indices = @transform_5, window_bounds = array<i64: 128, 64>}, {pipeline_mode = #tpu.pipeline_mode<synchronous>, transform_indices = @transform_6, window_bounds = array<i64: 1, 64>}, {pipeline_mode = #tpu.pipeline_mode<synchronous>, transform_indices = @transform_7, window_bounds = array<i64: 1, 64>}, {pipeline_mode = #tpu.pipeline_mode<synchronous>, transform_indices = @transform_8, window_bounds = array<i64: 1, 64>}, {pipeline_mode = #tpu.pipeline_mode<synchronous>, transform_indices = @transform_9, window_bounds = array<i64: 64, 4>}, {pipeline_mode = #tpu.pipeline_mode<synchronous>, transform_indices = @transform_10, window_bounds = array<i64: 1, 4>}, {transform_indices = @transform_11, window_bounds = array<i64: 16, 4>}]} {
    %c0 = arith.constant 0 : index
    %c0_0 = arith.constant 0 : index
    %0 = vector.load %arg1[%c0, %c0_0] : memref<16x12xf32, #tpu.memory_space<vmem>>, vector<16x12xf32>
    %c0_1 = arith.constant 0 : index
    %c0_2 = arith.constant 0 : index
    %1 = vector.load %arg2[%c0_1, %c0_2] : memref<12x128xf32, #tpu.memory_space<vmem>>, vector<12x128xf32>
    %cst = arith.constant dense<0.000000e+00> : vector<16x128xf32>
    %2 = tpu.matmul %0, %1, %cst {dimension_numbers = #tpu.dot_dimension_numbers<[1], [0], [0], [1], [0, 0, 1, 1], [], []>} : vector<16x12xf32>, vector<12x128xf32>, vector<16x128xf32> -> vector<16x128xf32>
    %c0_3 = arith.constant 0 : index
    %c0_4 = arith.constant 0 : index
    %3 = vector.load %arg3[%c0_3, %c0_4] : memref<1x128xf32, #tpu.memory_space<vmem>>, vector<1x128xf32>
    %4 = vector.broadcast %3 : vector<1x128xf32> to vector<16x128xf32>
    %5 = arith.addf %2, %4 : vector<16x128xf32>
    %c0_5 = arith.constant 0 : index
    %c0_6 = arith.constant 0 : index
    %6 = vector.load %arg4[%c0_5, %c0_6] : memref<1x128xf32, #tpu.memory_space<vmem>>, vector<1x128xf32>
    %c0_7 = arith.constant 0 : index
    %c0_8 = arith.constant 0 : index
    %7 = vector.load %arg5[%c0_7, %c0_8] : memref<1x128xf32, #tpu.memory_space<vmem>>, vector<1x128xf32>
    %cst_9 = arith.constant dense<0.000000e+00> : vector<16xf32>
    %8 = vector.multi_reduction <add>, %5, %cst_9 [1] : vector<16x128xf32> to vector<16xf32>
    %9 = vector.shape_cast %8 : vector<16xf32> to vector<16x1xf32>
    %10 = arith.mulf %5, %5 : vector<16x128xf32>
    %cst_10 = arith.constant dense<0.000000e+00> : vector<16xf32>
    %11 = vector.multi_reduction <add>, %10, %cst_10 [1] : vector<16x128xf32> to vector<16xf32>
    %12 = vector.shape_cast %11 : vector<16xf32> to vector<16x1xf32>
    %cst_11 = arith.constant 7.812500e-03 : f32
    %13 = vector.broadcast %cst_11 : f32 to vector<16x1xf32>
    %14 = arith.mulf %9, %13 : vector<16x1xf32>
    %cst_12 = arith.constant 7.812500e-03 : f32
    %15 = vector.broadcast %cst_12 : f32 to vector<16x1xf32>
    %16 = arith.mulf %12, %15 : vector<16x1xf32>
    %17 = arith.mulf %14, %14 : vector<16x1xf32>
    %18 = arith.subf %16, %17 : vector<16x1xf32>
    %cst_13 = arith.constant 0.000000e+00 : f32
    %19 = vector.broadcast %cst_13 : f32 to vector<16x1xf32>
    %20 = arith.maximumf %18, %19 : vector<16x1xf32>
    %21 = vector.broadcast %14 : vector<16x1xf32> to vector<16x128xf32>
    %22 = arith.subf %5, %21 : vector<16x128xf32>
    %cst_14 = arith.constant 9.99999974E-6 : f32
    %23 = vector.broadcast %cst_14 : f32 to vector<16x1xf32>
    %24 = arith.addf %20, %23 : vector<16x1xf32>
    %25 = math.rsqrt %24 : vector<16x1xf32>
    %26 = vector.broadcast %25 : vector<16x1xf32> to vector<16x128xf32>
    %27 = arith.mulf %22, %26 : vector<16x128xf32>
    %28 = vector.broadcast %6 : vector<1x128xf32> to vector<16x128xf32>
    %29 = arith.mulf %27, %28 : vector<16x128xf32>
    %30 = vector.broadcast %7 : vector<1x128xf32> to vector<16x128xf32>
    %31 = arith.addf %29, %30 : vector<16x128xf32>
    %cst_15 = arith.constant 0.000000e+00 : f32
    %32 = vector.broadcast %cst_15 : f32 to vector<16x128xf32>
    %33 = arith.maximumf %31, %32 : vector<16x128xf32>
    %c0_16 = arith.constant 0 : index
    %c0_17 = arith.constant 0 : index
    %34 = vector.load %arg6[%c0_16, %c0_17] : memref<128x64xf32, #tpu.memory_space<vmem>>, vector<128x64xf32>
    %cst_18 = arith.constant dense<0.000000e+00> : vector<16x64xf32>
    %35 = tpu.matmul %33, %34, %cst_18 {dimension_numbers = #tpu.dot_dimension_numbers<[1], [0], [0], [1], [0, 0, 1, 1], [], []>} : vector<16x128xf32>, vector<128x64xf32>, vector<16x64xf32> -> vector<16x64xf32>
    %c0_19 = arith.constant 0 : index
    %c0_20 = arith.constant 0 : index
    %36 = vector.load %arg7[%c0_19, %c0_20] : memref<1x64xf32, #tpu.memory_space<vmem>>, vector<1x64xf32>
    %37 = vector.broadcast %36 : vector<1x64xf32> to vector<16x64xf32>
    %38 = arith.addf %35, %37 : vector<16x64xf32>
    %c0_21 = arith.constant 0 : index
    %c0_22 = arith.constant 0 : index
    %39 = vector.load %arg8[%c0_21, %c0_22] : memref<1x64xf32, #tpu.memory_space<vmem>>, vector<1x64xf32>
    %c0_23 = arith.constant 0 : index
    %c0_24 = arith.constant 0 : index
    %40 = vector.load %arg9[%c0_23, %c0_24] : memref<1x64xf32, #tpu.memory_space<vmem>>, vector<1x64xf32>
    %cst_25 = arith.constant dense<0.000000e+00> : vector<16xf32>
    %41 = vector.multi_reduction <add>, %38, %cst_25 [1] : vector<16x64xf32> to vector<16xf32>
    %42 = vector.shape_cast %41 : vector<16xf32> to vector<16x1xf32>
    %43 = arith.mulf %38, %38 : vector<16x64xf32>
    %cst_26 = arith.constant dense<0.000000e+00> : vector<16xf32>
    %44 = vector.multi_reduction <add>, %43, %cst_26 [1] : vector<16x64xf32> to vector<16xf32>
    %45 = vector.shape_cast %44 : vector<16xf32> to vector<16x1xf32>
    %cst_27 = arith.constant 1.562500e-02 : f32
    %46 = vector.broadcast %cst_27 : f32 to vector<16x1xf32>
    %47 = arith.mulf %42, %46 : vector<16x1xf32>
    %cst_28 = arith.constant 1.562500e-02 : f32
    %48 = vector.broadcast %cst_28 : f32 to vector<16x1xf32>
    %49 = arith.mulf %45, %48 : vector<16x1xf32>
    %50 = arith.mulf %47, %47 : vector<16x1xf32>
    %51 = arith.subf %49, %50 : vector<16x1xf32>
    %cst_29 = arith.constant 0.000000e+00 : f32
    %52 = vector.broadcast %cst_29 : f32 to vector<16x1xf32>
    %53 = arith.maximumf %51, %52 : vector<16x1xf32>
    %54 = vector.broadcast %47 : vector<16x1xf32> to vector<16x64xf32>
    %55 = arith.subf %38, %54 : vector<16x64xf32>
    %cst_30 = arith.constant 9.99999974E-6 : f32
    %56 = vector.broadcast %cst_30 : f32 to vector<16x1xf32>
    %57 = arith.addf %53, %56 : vector<16x1xf32>
    %58 = math.rsqrt %57 : vector<16x1xf32>
    %59 = vector.broadcast %58 : vector<16x1xf32> to vector<16x64xf32>
    %60 = arith.mulf %55, %59 : vector<16x64xf32>
    %61 = vector.broadcast %39 : vector<1x64xf32> to vector<16x64xf32>
    %62 = arith.mulf %60, %61 : vector<16x64xf32>
    %63 = vector.broadcast %40 : vector<1x64xf32> to vector<16x64xf32>
    %64 = arith.addf %62, %63 : vector<16x64xf32>
    %cst_31 = arith.constant 0.000000e+00 : f32
    %65 = vector.broadcast %cst_31 : f32 to vector<16x64xf32>
    %66 = arith.maximumf %64, %65 : vector<16x64xf32>
    %c0_32 = arith.constant 0 : index
    %c0_33 = arith.constant 0 : index
    %67 = vector.load %arg10[%c0_32, %c0_33] : memref<64x4xf32, #tpu.memory_space<vmem>>, vector<64x4xf32>
    %cst_34 = arith.constant dense<0.000000e+00> : vector<16x4xf32>
    %68 = tpu.matmul %66, %67, %cst_34 {dimension_numbers = #tpu.dot_dimension_numbers<[1], [0], [0], [1], [0, 0, 1, 1], [], []>} : vector<16x64xf32>, vector<64x4xf32>, vector<16x4xf32> -> vector<16x4xf32>
    %c0_35 = arith.constant 0 : index
    %c0_36 = arith.constant 0 : index
    %69 = vector.load %arg11[%c0_35, %c0_36] : memref<1x4xf32, #tpu.memory_space<vmem>>, vector<1x4xf32>
    %70 = vector.broadcast %69 : vector<1x4xf32> to vector<16x4xf32>
    %71 = arith.addf %68, %70 : vector<16x4xf32>
    %c0_37 = arith.constant 0 : index
    %c0_38 = arith.constant 0 : index
    %72 = vector.load %arg12[%c0_37, %c0_38] : memref<16x4xf32, #tpu.memory_space<vmem>>, vector<16x4xf32>
    tpu.vector_store %arg12[%c0_37, %c0_38], %71 {strides = array<i32>} : memref<16x4xf32, #tpu.memory_space<vmem>>, vector<16x4xf32>,
    return
  }
  func.func @transform_0(%arg0: i32) -> (i32, i32) {
    %c0_i32 = arith.constant 0 : i32
    %c0_i32_0 = arith.constant 0 : i32
    return %arg0, %c0_i32 : i32, i32
  }
  func.func @transform_1(%arg0: i32) -> (i32, i32) {
    %c0_i32 = arith.constant 0 : i32
    %c0_i32_0 = arith.constant 0 : i32
    %c0_i32_1 = arith.constant 0 : i32
    return %c0_i32, %c0_i32_0 : i32, i32
  }
  func.func @transform_2(%arg0: i32) -> (i32, i32) {
    %c0_i32 = arith.constant 0 : i32
    %c0_i32_0 = arith.constant 0 : i32
    %c0_i32_1 = arith.constant 0 : i32
    return %c0_i32, %c0_i32_0 : i32, i32
  }
  func.func @transform_3(%arg0: i32) -> (i32, i32) {
    %c0_i32 = arith.constant 0 : i32
    %c0_i32_0 = arith.constant 0 : i32
    %c0_i32_1 = arith.constant 0 : i32
    return %c0_i32, %c0_i32_0 : i32, i32
  }
  func.func @transform_4(%arg0: i32) -> (i32, i32) {
    %c0_i32 = arith.constant 0 : i32
    %c0_i32_0 = arith.constant 0 : i32
    %c0_i32_1 = arith.constant 0 : i32
    return %c0_i32, %c0_i32_0 : i32, i32
  }
  func.func @transform_5(%arg0: i32) -> (i32, i32) {
    %c0_i32 = arith.constant 0 : i32
    %c0_i32_0 = arith.constant 0 : i32
    %c0_i32_1 = arith.constant 0 : i32
    return %c0_i32, %c0_i32_0 : i32, i32
  }
  func.func @transform_6(%arg0: i32) -> (i32, i32) {
    %c0_i32 = arith.constant 0 : i32
    %c0_i32_0 = arith.constant 0 : i32
    %c0_i32_1 = arith.constant 0 : i32
    return %c0_i32, %c0_i32_0 : i32, i32
  }
  func.func @transform_7(%arg0: i32) -> (i32, i32) {
    %c0_i32 = arith.constant 0 : i32
    %c0_i32_0 = arith.constant 0 : i32
    %c0_i32_1 = arith.constant 0 : i32
    return %c0_i32, %c0_i32_0 : i32, i32
  }
  func.func @transform_8(%arg0: i32) -> (i32, i32) {
    %c0_i32 = arith.constant 0 : i32
    %c0_i32_0 = arith.constant 0 : i32
    %c0_i32_1 = arith.constant 0 : i32
    return %c0_i32, %c0_i32_0 : i32, i32
  }
  func.func @transform_9(%arg0: i32) -> (i32, i32) {
    %c0_i32 = arith.constant 0 : i32
    %c0_i32_0 = arith.constant 0 : i32
    %c0_i32_1 = arith.constant 0 : i32
    return %c0_i32, %c0_i32_0 : i32, i32
  }
  func.func @transform_10(%arg0: i32) -> (i32, i32) {
    %c0_i32 = arith.constant 0 : i32
    %c0_i32_0 = arith.constant 0 : i32
    %c0_i32_1 = arith.constant 0 : i32
    return %c0_i32, %c0_i32_0 : i32, i32
  }
  func.func @transform_11(%arg0: i32) -> (i32, i32) {
    %c0_i32 = arith.constant 0 : i32
    %c0_i32_0 = arith.constant 0 : i32
    return %arg0, %c0_i32 : i32, i32
  }
}

</mosaic_0001>

<bundles_post_ra>
// kernel: tpu_custom_call.1
= control target key start
LH: loop header
LB: loop body
LE: loop exit
PB: predicated region body
PF: predicated region fallthrough
CT: control target
= control target key end

     0   :  { %s1041_s17 = smov 0   ;;  %s1182_s0 = inlined_call_operand.vmem [shape: f32[64,12], index: 0, kind: input, shape index: {}]   ;;  %s1183_s1 = inlined_call_operand.vmem [shape: f32[12,128], index: 1, kind: input, shape index: {}]   ;;  %s1184_s2 = inlined_call_operand.vmem [shape: f32[1,128], index: 2, kind: input, shape index: {}]   ;;  %s1185_s3 = inlined_call_operand.vmem [shape: f32[1,128], index: 3, kind: input, shape index: {}]   ;;  %s1186_s4 = inlined_call_operand.vmem [shape: f32[1,128], index: 4, kind: input, shape index: {}]   ;;  %s1187_s5 = inlined_call_operand.vmem [shape: f32[128,64], index: 5, kind: input, shape index: {}]   ;;  %s1188_s6 = inlined_call_operand.vmem [shape: f32[1,64], index: 6, kind: input, shape index: {}]   ;;  %s1189_s7 = inlined_call_operand.vmem [shape: f32[1,64], index: 7, kind: input, shape index: {}]   ;;  %s1190_s8 = inlined_call_operand.vmem [shape: f32[1,64], index: 8, kind: input, shape index: {}]   ;;  %s1191_s9 = inlined_call_operand.vmem [shape: f32[64,4], index: 9, kind: input, shape index: {}]   ;;  %s1192_s10 = inlined_call_operand.vmem [shape: f32[1,4], index: 10, kind: input, shape index: {}]   ;;  %s1193_s11 = inlined_call_operand.vmem [shape: f32[64,4], index: 11, kind: output, shape index: {}]  }
   0x1 LB: > { %s841_s18 = sadd.s32 4294967295, %s979_s17   ;;  %p845_p0 = scmp.ge.s32.totalorder %s979_s17, 1  ;;  %s979_s17 = sphi %s1041_s17, %s21_s17  }
   0x2   : > { %p338_p1 = scmp.lt.s32.totalorder %s979_s17, 5 }
   0x4   : > { %p339_p2 = pnand %p845_p0, %p338_p1 }
   0x5   : > { %s846_s23 = sshll.u32 (!%p339_p2), %s841_s18, 1 }
   0x6   : > { %342 = sbr.rel (%p339_p2) target bundleno = 956 (0x3bc), region = 64  ;;  %p379_p3 = scmp.lt.s32.totalorder (!%p339_p2), %s846_s23, 7 }
   0xb   : > { %v393_v0 = vld [vmem:[%s1183_s1 + $0x8] sm:$0xf]  ;;  %vm408_vm0 = vcmask 1043456   ;;  %v392_v1 = vld [vmem:[%s1183_s1] sm:$0xff]  ;;  %s1195_s23 = smov (!%p379_p3, %s846_s23), 7  ;;  %vm401_vm1 = vcmask 97280  }
   0xc   : > { %896 = vmatprep.subr.msk.mxu0 %vm408_vm0, %v393_v0  ;;  %s847_s24 = sshll.u32 %s1195_s23, 3  ;;  %v850_v5 = vld [vmem:[%s1184_s2] ss:$0 sm:$0xff]  ;;  %v550_v11 = vld [vmem:[%s1187_s5 + $0x78] sm:$0xff]  ;;  %v549_v12 = vld [vmem:[%s1187_s5 + $0x70] sm:$0xff]  ;;  %vm635_vm2 = vcmask 523264  }
   0xd   : > { %897 = vmatpush3.msk.msra.mxu0 %vm408_vm0, %v393_v0  ;;  %s382_s27 = scalar_lea.vmem %s1182_s0, %s847_s24  ;;  %903 = vmatprep.subr.mxu1 %v550_v11  ;;  %v548_v13 = vld [vmem:[%s1187_s5 + $0x68] sm:$0xff]  ;;  %v547_v14 = vld [vmem:[%s1187_s5 + $0x60] sm:$0xff]  ;;  %v546_v15 = vld [vmem:[%s1187_s5 + $0x58] sm:$0xff]  ;;  %s388_s28 = scalar_lea.vmem %s1193_s11, %s847_s24  ;;  %vm782_vm3 = vcmask 31744  }
   0xe   : > { %898 = vmatprep.subr.mxu0 %v392_v1  ;;  %v390_v2 = vld [vmem:[%s382_s27] sm:$0xff]  ;;  %v391_v3 = vld [vmem:[%s382_s27 + $0x8] sm:$0xff]  ;;  %904 = vmatpush3.msra.mxu1 %v550_v11  ;;  %v545_v16 = vld [vmem:[%s1187_s5 + $0x50] sm:$0xff] }
   0xf   : > { %899 = vmatpush3.msra.mxu0 %v392_v1  ;;  %900 = vmatprep.mubr.msk.f32.mxu0 %vm401_vm1, %v390_v2  ;;  %v544_v17 = vld [vmem:[%s1187_s5 + $0x48] sm:$0xff]  ;;  %v543_v18 = vld [vmem:[%s1187_s5 + $0x40] sm:$0xff]  ;;  %v542_v19 = vld [vmem:[%s1187_s5 + $0x38] sm:$0xff] }
  0x10   : > { %901 = vmatmul.mubr.msk.f32.vlgmr.msra.gmra.mxu0 %vm401_vm1, %v391_v3  ;;  %905 = vmatprep.subr.mxu1 %v549_v12  ;;  %v541_v20 = vld [vmem:[%s1187_s5 + $0x30] sm:$0xff]  ;;  %v540_v21 = vld [vmem:[%s1187_s5 + $0x28] sm:$0xff]  ;;  %v539_v22 = vld [vmem:[%s1187_s5 + $0x20] sm:$0xff] }
  0x11   : > { %906 = vmatpush3.msra.mxu1 %v549_v12  ;;  %v538_v23 = vld [vmem:[%s1187_s5 + $0x18] sm:$0xff]  ;;  %v537_v24 = vld [vmem:[%s1187_s5 + $0x10] sm:$0xff]  ;;  %v536_v25 = vld [vmem:[%s1187_s5 + $0x8] sm:$0xff] }
  0x12   : > { %907 = vmatprep.subr.mxu1 %v548_v13  ;;  %v535_v26 = vld [vmem:[%s1187_s5] sm:$0xff] }
  0x13   : > { %908 = vmatpush3.msra.mxu1 %v548_v13  ;;  %v854_v45 = vld [vmem:[%s1185_s3] ss:$0 sm:$0xff] }
  0x14   : > { %909 = vmatprep.subr.mxu1 %v547_v14  ;;  %v855_v47 = vld [vmem:[%s1186_s4] ss:$0 sm:$0xff] }
  0x15   : > { %910 = vmatpush3.msra.mxu1 %v547_v14  ;;  %v856_v57 = vld [vmem:[%s1188_s6] ss:$0 sm:$0xff] }
  0x16   : > { %911 = vmatprep.subr.mxu1 %v546_v15  ;;  %v686_v11 = vld [vmem:[%s1191_s9] sm:$0xff] }
  0x17   : > { %912 = vmatpush3.msra.mxu1 %v546_v15 }
  0x18   : > { %913 = vmatprep.subr.mxu1 %v545_v16 }
  0x19   : > { %914 = vmatpush3.msra.mxu1 %v545_v16 }
  0x1a   : > { %915 = vmatprep.subr.mxu1 %v544_v17 }
  0x1b   : > { %916 = vmatpush3.msra.mxu1 %v544_v17 }
  0x1c   : > { %917 = vmatprep.subr.mxu1 %v543_v18 }
  0x1d   : > { %918 = vmatpush3.msra.mxu1 %v543_v18 }
  0x1e   : > { %919 = vmatprep.subr.mxu1 %v542_v19 }
  0x1f   : > { %920 = vmatpush3.msra.mxu1 %v542_v19 }
  0x20   : > { %921 = vmatprep.subr.mxu1 %v541_v20 }
  0x21   : > { %922 = vmatpush3.msra.mxu1 %v541_v20 }
  0x22   : > { %923 = vmatprep.subr.mxu1 %v540_v21 }
  0x23   : > { %924 = vmatpush3.msra.mxu1 %v540_v21 }
  0x24   : > { %925 = vmatprep.subr.mxu1 %v539_v22 }
  0x25   : > { %926 = vmatpush3.msra.mxu1 %v539_v22 }
  0x26   : > { %927 = vmatprep.subr.mxu1 %v538_v23 }
  0x27   : > { %928 = vmatpush3.msra.mxu1 %v538_v23 }
  0x28   : > { %929 = vmatprep.subr.mxu1 %v537_v24 }
  0x29   : > { %930 = vmatpush3.msra.mxu1 %v537_v24 }
  0x2a   : > { %931 = vmatprep.subr.mxu1 %v536_v25 }
  0x2b   : > { %932 = vmatpush3.msra.mxu1 %v536_v25 }
  0x2c   : > { %933 = vmatprep.subr.mxu1 %v535_v26 }
  0x2d   : > { %934 = vmatpush3.msra.mxu1 %v535_v26 }
  0xd0   : > { %v902_v4 = vpop.f32.mrf.mxu0 }
  0xd1   : > { %v1068_v8 = vadd.f32 %v902_v4, %v850_v5  ;;  %v693_v4 = vld [vmem:[%s1191_s9 + $0x38] sm:$0xff] }
  0xd2   : > { %v478_v6 = vpop.f32.mrf.mxu0  ;;  %938 = vmatprep.subr.mxu0 %v693_v4 }
  0xd3   : > { %v1066_v7 = vadd.f32 %v850_v5, %v478_v6  ;;  %v494_v10 = vmul.f32 %v1068_v8, %v1068_v8  ;;  %v692_v5 = vld [vmem:[%s1191_s9 + $0x30] sm:$0xff]  ;;  %939 = vmatpush3.msra.mxu0 %v693_v4  ;;  %v691_v6 = vld [vmem:[%s1191_s9 + $0x28] sm:$0xff] }
  0xd4   : > { %940 = vmatprep.subr.mxu0 %v692_v5 }
  0xd5   : > { %489 = vadd.xlane.f32.xlu0 %v1066_v7  ;;  %v493_v9 = vmul.f32 %v1066_v7, %v1066_v7  ;;  %941 = vmatpush3.msra.mxu0 %v692_v5 }
  0xd6   : > { %942 = vmatprep.subr.mxu0 %v691_v6 }
  0xd7   : > { %495 = vadd.xlane.f32.xlu1 %v493_v9  ;;  %943 = vmatpush3.msra.mxu0 %v691_v6  ;;  %v688_v9 = vld [vmem:[%s1191_s9 + $0x10] sm:$0xff] }
  0xd9   : > { %491 = vadd.xlane.f32.xlu0 %v1068_v8 }
  0xdb   : > { %497 = vadd.xlane.f32.xlu1 %v494_v10  ;;  %v687_v10 = vld [vmem:[%s1191_s9 + $0x8] sm:$0xff] }
 0x15e   : > { %v490_v27 = vpop.xlane.xlu0 %489 }
 0x15f   : > { %v499_v28 = vmul.f32 0.0078125, %v490_v27 }
 0x160   : > { %v496_v29 = vpop.xlane.xlu1 %495 }
 0x161   : > { %v503_v30 = vmul.f32 %v499_v28, %v499_v28  ;;  %v501_v31 = vmul.f32 0.0078125, %v496_v29  ;;  %v509_v43 = vsub.f32 %v1066_v7, %v499_v28  ;;  %v690_v7 = vld [vmem:[%s1191_s9 + $0x20] sm:$0xff] }
 0x162   : > { %v492_v32 = vpop.xlane.xlu0 %491  ;;  %944 = vmatprep.subr.mxu0 %v690_v7 }
 0x163   : > { %v505_v33 = vsub.f32 %v501_v31, %v503_v30  ;;  %v500_v34 = vmul.f32 0.0078125, %v492_v32  ;;  %945 = vmatpush3.msra.mxu0 %v690_v7  ;;  %v857_v30 = vld [vmem:[%s1189_s7] ss:$0 sm:$0xff] }
 0x164   : > { %v498_v35 = vpop.xlane.xlu1 %497 }
 0x165   : > { %v507_v36 = vmax.f32 %v505_v33, 0.0  ;;  %v504_v37 = vmul.f32 %v500_v34, %v500_v34  ;;  %v502_v38 = vmul.f32 0.0078125, %v498_v35  ;;  %v510_v48 = vsub.f32 %v1068_v8, %v500_v34  ;;  %v689_v8 = vld [vmem:[%s1191_s9 + $0x18] sm:$0xff]  ;;  %v858_v34 = vld [vmem:[%s1190_s8] ss:$0 sm:$0xff] }
 0x166   : > { %946 = vmatprep.subr.mxu0 %v689_v8 }
 0x167   : > { %v511_v39 = vadd.f32 1e-05, %v507_v36  ;;  %v506_v40 = vsub.f32 %v502_v38, %v504_v37  ;;  %947 = vmatpush3.msra.mxu0 %v689_v8 }
 0x168   : > { %948 = vmatprep.subr.mxu0 %v688_v9 }
 0x169   : > { %965 = vrsqrt.f32 %v511_v39  ;;  %v508_v41 = vmax.f32 %v506_v40, 0.0  ;;  %949 = vmatpush3.msra.mxu0 %v688_v9 }
 0x16a   : > { %950 = vmatprep.subr.mxu0 %v687_v10 }
 0x16b   : > { %v512_v42 = vadd.f32 1e-05, %v508_v41  ;;  %951 = vmatpush3.msra.mxu0 %v687_v10 }
 0x16c   : > { %952 = vmatprep.subr.mxu0 %v686_v11 }
 0x16d   : > { %967 = vrsqrt.f32 %v512_v42  ;;  %953 = vmatpush3.msra.mxu0 %v686_v11 }
 0x176   : > { %v966_v44 = vpop.eup %965 }
 0x177   : > { %v515_v46 = vmul.f32 %v966_v44, %v509_v43  ;;  %v859_v43 = vld [vmem:[%s1192_s10] ss:$0 sm:$0xff] }
 0x179   : > { %v523_v49 = vmul.f32 %v854_v45, %v515_v46 }
 0x17a   : > { %v968_v50 = vpop.eup %967 }
 0x17b   : > { %v516_v51 = vmul.f32 %v968_v50, %v510_v48  ;;  %v531_v52 = vadd.f32 %v855_v47, %v523_v49 }
 0x17d   : > { %v524_v53 = vmul.f32 %v854_v45, %v516_v51  ;;  %v533_v54 = vmax.f32 %v531_v52, 0.0 }
 0x17f   : > { %v532_v55 = vadd.f32 %v855_v47, %v524_v53  ;;  %935 = vmatprep.mubr.f32.mxu1 %v533_v54 }
 0x181   : > { %v534_v56 = vmax.f32 %v532_v55, 0.0 }
 0x183   : > { %936 = vmatmul.mubr.f32.vlgmr.msra.gmra.mxu1 %v534_v56 }
 0x243   : > { %v937_v58 = vpop.f32.mrf.mxu1 }
 0x244   : > { %v630_v59 = vadd.f32 %v937_v58, %v856_v57 }
 0x245   : > { %v624_v60 = vpop.f32.mrf.mxu1 }
 0x246   : > { %v625_v61 = vadd.f32 %v856_v57, %v624_v60  ;;  %v639_v62 = vsel %vm635_vm2, %v630_v59, 0.0  ;;  %v643_v63 = vmul.f32 %v630_v59, %v630_v59 }
 0x247   : > { %640 = vadd.xlane.f32.xlu1 %v639_v62 }
 0x248   : > { %v636_v0 = vsel %vm635_vm2, %v625_v61, 0.0  ;;  %v642_v1 = vmul.f32 %v625_v61, %v625_v61  ;;  %v647_v2 = vsel %vm635_vm2, %v643_v63, 0.0 }
 0x249   : > { %637 = vadd.xlane.f32.xlu0 %v636_v0 }
 0x24a   : > { %v644_v3 = vsel %vm635_vm2, %v642_v1, 0.0 }
 0x24b   : > { %648 = vadd.xlane.f32.xlu1 %v647_v2 }
 0x24d   : > { %645 = vadd.xlane.f32.xlu0 %v644_v3 }
 0x2d0   : > { %v641_v12 = vpop.xlane.xlu1 %640 }
 0x2d1   : > { %v651_v13 = vmul.f32 0.015625, %v641_v12 }
 0x2d2   : > { %v638_v14 = vpop.xlane.xlu0 %637 }
 0x2d3   : > { %v650_v15 = vmul.f32 0.015625, %v638_v14  ;;  %v655_v17 = vmul.f32 %v651_v13, %v651_v13  ;;  %v661_v28 = vsub.f32 %v630_v59, %v651_v13 }
 0x2d4   : > { %v649_v16 = vpop.xlane.xlu1 %648 }
 0x2d5   : > { %v653_v18 = vmul.f32 0.015625, %v649_v16  ;;  %v654_v20 = vmul.f32 %v650_v15, %v650_v15  ;;  %v660_v31 = vsub.f32 %v625_v61, %v650_v15 }
 0x2d6   : > { %v646_v19 = vpop.xlane.xlu0 %645 }
 0x2d7   : > { %v657_v21 = vsub.f32 %v653_v18, %v655_v17  ;;  %v652_v22 = vmul.f32 0.015625, %v646_v19 }
 0x2d9   : > { %v659_v23 = vmax.f32 %v657_v21, 0.0  ;;  %v656_v24 = vsub.f32 %v652_v22, %v654_v20 }
 0x2db   : > { %v663_v25 = vadd.f32 1e-05, %v659_v23  ;;  %v658_v26 = vmax.f32 %v656_v24, 0.0 }
 0x2dd   : > { %969 = vrsqrt.f32 %v663_v25  ;;  %v662_v27 = vadd.f32 1e-05, %v658_v26 }
 0x2df   : > { %971 = vrsqrt.f32 %v662_v27 }
 0x2ea   : > { %v970_v29 = vpop.eup %969 }
 0x2eb   : > { %v667_v32 = vmul.f32 %v970_v29, %v661_v28 }
 0x2ec   : > { %v972_v33 = vpop.eup %971 }
 0x2ed   : > { %v666_v35 = vmul.f32 %v972_v33, %v660_v31  ;;  %v675_v36 = vmul.f32 %v857_v30, %v667_v32 }
 0x2ef   : > { %v674_v37 = vmul.f32 %v857_v30, %v666_v35  ;;  %v683_v38 = vadd.f32 %v858_v34, %v675_v36 }
 0x2f1   : > { %v682_v39 = vadd.f32 %v858_v34, %v674_v37  ;;  %v685_v41 = vmax.f32 %v683_v38, 0.0 }
 0x2f3   : > { %v684_v40 = vmax.f32 %v682_v39, 0.0 }
 0x2f5   : > { %954 = vmatprep.mubr.msk.f32.mxu0 %vm635_vm2, %v684_v40 }
 0x2f6   : > { %955 = vmatmul.mubr.msk.f32.vlgmr.msra.gmra.mxu0 %vm635_vm2, %v685_v41 }
 0x3b6   : > { %v956_v42 = vpop.f32.mrf.mxu0 }
 0x3b7   : > { %v779_v46 = vadd.f32 %v956_v42, %v859_v43 }
 0x3b8   : > { %v773_v44 = vpop.f32.mrf.mxu0 }
 0x3b9   : > { %v774_v45 = vadd.f32 %v859_v43, %v773_v44  ;;  %784 = vst.msk [vmem:[%s388_s28 + $0x8] sm:$0xff] %vm782_vm3, %v779_v46 }
 0x3bb   : > { %783 = vst.msk [vmem:[%s388_s28] sm:$0xff] %vm782_vm3, %v774_v45 }
 0x3bc PF: > { %s21_s17 = sadd.s32 1, %s979_s17  }
 0x3bd   : > { %p18_p4 = scmp.ge.s32.totalorder %s21_s17, 6  }
 0x3bf   :  { %20 = sbr.rel (!%p18_p4) target bundleno = 1 (0x1), region = 94 }

</bundles_post_ra>
